<compile_context>
chip_gen: v7x
topology: tpu7x:2x2x1
jax: 0.10.0
libtpu: 0.0.40
codegen_flags: <defaults>
</compile_context>

<pallas_src>
import functools
import math

import jax
import jax.numpy as jnp
from jax.experimental import pallas as pl
from jax.experimental.pallas import tpu as pltpu

EPS = 1e-5
_TARGET_BLOCK_BYTES = 2 * 1024 * 1024   # ~2 MiB input tiles (mem-bound kernel)
_VMEM_LIMIT_BYTES = 48 * 1024 * 1024    # safe on v5e/v6e (128 MiB) and v7x (64 MiB)


def _biasfree_ln_kernel(x_ref, w_ref, seg_ref, segt_ref, o_ref, *, inv_c):
    # x_ref   : (TM, k*C)  packed rows: k groups of C channels along lanes
    # w_ref   : (1,  k*C)  weight tiled k times
    # seg_ref : (k*C, k)   0/1 group-indicator matrix (f32)
    # segt_ref: (k,  k*C)  its transpose (precomputed in the wrapper)
    x = x_ref[...].astype(jnp.float32)
    w = w_ref[...].astype(jnp.float32)
    seg = seg_ref[...]
    seg_t = segt_ref[...]

    # Segmented sums over each C-wide lane group (MXU; full f32 precision).
    s1 = jnp.dot(x, seg, preferred_element_type=jnp.float32,
                 precision=jax.lax.Precision.HIGHEST)            # (TM, k) sum x
    s2 = jnp.dot(x * x, seg, preferred_element_type=jnp.float32,
                 precision=jax.lax.Precision.HIGHEST)            # (TM, k) sum x^2

    mean = s1 * inv_c
    var = s2 * inv_c - mean * mean                               # biased variance
    var = jnp.maximum(var, 0.0)                                  # guard f32 cancellation
    inv = jax.lax.rsqrt(var + EPS)                               # (TM, k)

    # Broadcast each group's 1/sqrt(var+eps) back across its C lanes.
    inv_full = jnp.dot(inv, seg_t, preferred_element_type=jnp.float32,
                       precision=jax.lax.Precision.HIGHEST)      # (TM, k*C)

    # BiasFree: x (NOT x - mean) * rsqrt(var + eps) * weight.
    o_ref[...] = (x * inv_full * w).astype(o_ref.dtype)


def _pick_row_tile(prows, kc, itemsize):
    # ~2 MiB input blocks, multiple of 8 sublanes.
    row_tile = max(8, (_TARGET_BLOCK_BYTES // (kc * itemsize)) // 8 * 8)
    if row_tile >= prows:
        if prows >= 16:
            # Split into at least 2 blocks so a 2-TensorCore chip isn't stranded.
            row_tile = max(8, ((prows + 15) // 16) * 8)
        else:
            row_tile = prows  # full-extent block (exempt from the 8-sublane rule)
    return row_tile


@jax.jit
def biasfree_layernorm(x, weight):
    """x: (..., C), weight: (C,). Returns same shape/dtype as x."""
    orig_shape = x.shape
    C = orig_shape[-1]
    assert weight.shape == (C,)
    rows = math.prod(orig_shape[:-1])

    # Lane-dense packing: fold k rows into one packed row of width k*C,
    # where k*C is a multiple of 128 (full vreg lane width).
    k = 128 // math.gcd(C, 128)
    if k > 1 and rows % k != 0:
        k = 1  # rows not divisible by k -> fall back to unpacked layout
    kc = k * C
    prows = rows // k

    xp = x.reshape(prows, kc)                       # bitcast reshape, no copy
    wp = jnp.tile(weight.reshape(1, C), (1, k))     # (1, k*C)

    lane_group = jnp.arange(kc, dtype=jnp.int32) // C
    seg = (lane_group[:, None] ==
           jnp.arange(k, dtype=jnp.int32)[None, :]).astype(jnp.float32)  # (kc, k)
    seg_t = seg.T                                                        # (k, kc)

    itemsize = jnp.dtype(x.dtype).itemsize
    row_tile = _pick_row_tile(prows, kc, itemsize)
    grid = (pl.cdiv(prows, row_tile),)              # ragged last block handled by Pallas

    kernel = functools.partial(_biasfree_ln_kernel, inv_c=1.0 / C)

    out = pl.pallas_call(
        kernel,
        out_shape=jax.ShapeDtypeStruct((prows, kc), x.dtype),
        grid_spec=pltpu.PrefetchScalarGridSpec(
            num_scalar_prefetch=0,
            grid=grid,
            in_specs=[
                pl.BlockSpec((row_tile, kc), lambda i: (i, 0)),
                pl.BlockSpec((1, kc), lambda i: (0, 0)),
                pl.BlockSpec((kc, k), lambda i: (0, 0)),
                pl.BlockSpec((k, kc), lambda i: (0, 0)),
            ],
            out_specs=pl.BlockSpec((row_tile, kc), lambda i: (i, 0)),
        ),
        compiler_params=pltpu.CompilerParams(
            dimension_semantics=("parallel",),
            vmem_limit_bytes=_VMEM_LIMIT_BYTES,
        ),
    )(xp, wp, seg, seg_t)

    return out.reshape(orig_shape)


def _reference(x, weight):
    x32 = x.astype(jnp.float32)
    var = jnp.var(x32, axis=-1, keepdims=True)  # biased (ddof=0) == unbiased=False
    return (x32 / jnp.sqrt(var + EPS) * weight.astype(jnp.float32)).astype(x.dtype)


if __name__ == "__main__":
    key = jax.random.PRNGKey(0)
    kx, kw = jax.random.split(key)

    # Text_IF feeds this module channel-last tokens: (B, H*W, C).
    B, HW, C = 2, 256, 32
    x = jax.random.normal(kx, (B, HW, C), dtype=jnp.float32)

    # Module init is weight = ones; also test a non-trivial weight to exercise
    # the lane-packed weight path.
    w_ones = jnp.ones((C,), dtype=jnp.float32)
    w_rand = 1.0 + 0.1 * jax.random.normal(kw, (C,), dtype=jnp.float32)

    out1 = jax.block_until_ready(biasfree_layernorm(x, w_ones))
    out2 = jax.block_until_ready(biasfree_layernorm(x, w_rand))

    ref1 = _reference(x, w_ones)
    ref2 = _reference(x, w_rand)

    assert out1.shape == x.shape and out1.dtype == x.dtype
    assert jnp.allclose(out1, ref1, atol=1e-4, rtol=1e-4), "mismatch vs reference (ones weight)"
    assert jnp.allclose(out2, ref2, atol=1e-4, rtol=1e-4), "mismatch vs reference (random weight)"

    print("KERNEL_OK")
</pallas_src>

<mosaic_0001>
module attributes {stable_mosaic.version = 11 : i64} {
  func.func @_biasfree_ln_kernel(%arg0: i32, %arg1: memref<64x128xf32, #tpu.memory_space<vmem>>, %arg2: memref<1x128xf32, #tpu.memory_space<vmem>>, %arg3: memref<128x4xf32, #tpu.memory_space<vmem>>, %arg4: memref<4x128xf32, #tpu.memory_space<vmem>>, %arg5: memref<64x128xf32, #tpu.memory_space<vmem>>) attributes {dimension_semantics = [#tpu.dimension_semantics<parallel>], iteration_bounds = array<i64: 2>, scalar_prefetch = 0 : i64, scratch_operands = 0 : i64, tpu.core_type = #tpu.core_type<tc>, window_params = [{transform_indices = @transform_0, window_bounds = array<i64: 64, 128>}, {pipeline_mode = #tpu.pipeline_mode<synchronous>, transform_indices = @transform_1, window_bounds = array<i64: 1, 128>}, {pipeline_mode = #tpu.pipeline_mode<synchronous>, transform_indices = @transform_2, window_bounds = array<i64: 128, 4>}, {pipeline_mode = #tpu.pipeline_mode<synchronous>, transform_indices = @transform_3, window_bounds = array<i64: 4, 128>}, {transform_indices = @transform_4, window_bounds = array<i64: 64, 128>}]} {
    %c0 = arith.constant 0 : index
    %c0_0 = arith.constant 0 : index
    %0 = vector.load %arg1[%c0, %c0_0] : memref<64x128xf32, #tpu.memory_space<vmem>>, vector<64x128xf32>
    %c0_1 = arith.constant 0 : index
    %c0_2 = arith.constant 0 : index
    %1 = vector.load %arg2[%c0_1, %c0_2] : memref<1x128xf32, #tpu.memory_space<vmem>>, vector<1x128xf32>
    %c0_3 = arith.constant 0 : index
    %c0_4 = arith.constant 0 : index
    %2 = vector.load %arg3[%c0_3, %c0_4] : memref<128x4xf32, #tpu.memory_space<vmem>>, vector<128x4xf32>
    %c0_5 = arith.constant 0 : index
    %c0_6 = arith.constant 0 : index
    %3 = vector.load %arg4[%c0_5, %c0_6] : memref<4x128xf32, #tpu.memory_space<vmem>>, vector<4x128xf32>
    %cst = arith.constant dense<0.000000e+00> : vector<64x4xf32>
    %4 = tpu.matmul %0, %2, %cst {dimension_numbers = #tpu.dot_dimension_numbers<[1], [0], [0], [1], [0, 0, 1, 1], [], []>, precision = #tpu.contract_precision<fp32>} : vector<64x128xf32>, vector<128x4xf32>, vector<64x4xf32> -> vector<64x4xf32>
    %5 = arith.mulf %0, %0 : vector<64x128xf32>
    %cst_7 = arith.constant dense<0.000000e+00> : vector<64x4xf32>
    %6 = tpu.matmul %5, %2, %cst_7 {dimension_numbers = #tpu.dot_dimension_numbers<[1], [0], [0], [1], [0, 0, 1, 1], [], []>, precision = #tpu.contract_precision<fp32>} : vector<64x128xf32>, vector<128x4xf32>, vector<64x4xf32> -> vector<64x4xf32>
    %cst_8 = arith.constant 3.125000e-02 : f32
    %7 = vector.broadcast %cst_8 : f32 to vector<64x4xf32>
    %8 = arith.mulf %4, %7 : vector<64x4xf32>
    %cst_9 = arith.constant 3.125000e-02 : f32
    %9 = vector.broadcast %cst_9 : f32 to vector<64x4xf32>
    %10 = arith.mulf %6, %9 : vector<64x4xf32>
    %11 = arith.mulf %8, %8 : vector<64x4xf32>
    %12 = arith.subf %10, %11 : vector<64x4xf32>
    %cst_10 = arith.constant 0.000000e+00 : f32
    %13 = vector.broadcast %cst_10 : f32 to vector<64x4xf32>
    %14 = arith.maximumf %12, %13 : vector<64x4xf32>
    %cst_11 = arith.constant 9.99999974E-6 : f32
    %15 = vector.broadcast %cst_11 : f32 to vector<64x4xf32>
    %16 = arith.addf %14, %15 : vector<64x4xf32>
    %17 = math.rsqrt %16 : vector<64x4xf32>
    %cst_12 = arith.constant dense<0.000000e+00> : vector<64x128xf32>
    %18 = tpu.matmul %17, %3, %cst_12 {dimension_numbers = #tpu.dot_dimension_numbers<[1], [0], [0], [1], [0, 0, 1, 1], [], []>, precision = #tpu.contract_precision<fp32>} : vector<64x4xf32>, vector<4x128xf32>, vector<64x128xf32> -> vector<64x128xf32>
    %19 = arith.mulf %0, %18 : vector<64x128xf32>
    %20 = vector.broadcast %1 : vector<1x128xf32> to vector<64x128xf32>
    %21 = arith.mulf %19, %20 : vector<64x128xf32>
    %c0_13 = arith.constant 0 : index
    %c0_14 = arith.constant 0 : index
    %22 = vector.load %arg5[%c0_13, %c0_14] : memref<64x128xf32, #tpu.memory_space<vmem>>, vector<64x128xf32>
    tpu.vector_store %arg5[%c0_13, %c0_14], %21 {strides = array<i32>} : memref<64x128xf32, #tpu.memory_space<vmem>>, vector<64x128xf32>,
    return
  }
  func.func @transform_0(%arg0: i32) -> (i32, i32) {
    %c0_i32 = arith.constant 0 : i32
    %c0_i32_0 = arith.constant 0 : i32
    return %arg0, %c0_i32 : i32, i32
  }
  func.func @transform_1(%arg0: i32) -> (i32, i32) {
    %c0_i32 = arith.constant 0 : i32
    %c0_i32_0 = arith.constant 0 : i32
    %c0_i32_1 = arith.constant 0 : i32
    return %c0_i32, %c0_i32_0 : i32, i32
  }
  func.func @transform_2(%arg0: i32) -> (i32, i32) {
    %c0_i32 = arith.constant 0 : i32
    %c0_i32_0 = arith.constant 0 : i32
    %c0_i32_1 = arith.constant 0 : i32
    return %c0_i32, %c0_i32_0 : i32, i32
  }
  func.func @transform_3(%arg0: i32) -> (i32, i32) {
    %c0_i32 = arith.constant 0 : i32
    %c0_i32_0 = arith.constant 0 : i32
    %c0_i32_1 = arith.constant 0 : i32
    return %c0_i32, %c0_i32_0 : i32, i32
  }
  func.func @transform_4(%arg0: i32) -> (i32, i32) {
    %c0_i32 = arith.constant 0 : i32
    %c0_i32_0 = arith.constant 0 : i32
    return %arg0, %c0_i32 : i32, i32
  }
}

</mosaic_0001>

<bundles_post_ra>
// kernel: biasfree_layernorm.1
= control target key start
LH: loop header
LB: loop body
LE: loop exit
PB: predicated region body
PF: predicated region fallthrough
CT: control target
= control target key end

     0   :  { %s4572_s15 = smov 0   ;;  %s5453_s0 = inlined_call_operand.vmem [shape: f32[128,128], index: 0, kind: input, shape index: {}]   ;;  %s5454_s1 = inlined_call_operand.vmem [shape: f32[1,128], index: 1, kind: input, shape index: {}]   ;;  %s5455_s2 = inlined_call_operand.vmem [shape: f32[128,4], index: 2, kind: input, shape index: {}]   ;;  %s5456_s3 = inlined_call_operand.vmem [shape: f32[4,128], index: 3, kind: input, shape index: {}]   ;;  %s5457_s4 = inlined_call_operand.vmem [shape: f32[128,128], index: 4, kind: output, shape index: {}]  }
   0x1 LB: > { %s3037_s16 = sadd.s32 4294967295, %s4545_s15   ;;  %p3041_p0 = scmp.ge.s32.totalorder %s4545_s15, 1  ;;  %s4545_s15 = sphi %s4572_s15, %s14_s15  }
   0x2   : > { %p163_p1 = scmp.lt.s32.totalorder %s4545_s15, 3 }
   0x4   : > { %p164_p2 = pnand %p3041_p0, %p163_p1 }
   0x6   : > { %167 = sbr.rel (%p164_p2) target bundleno = 774 (0x306), region = 36 }
   0xd   : > { %v210_v0 = vld [vmem:[%s5455_s2] sm:$0xff]  ;;  %v211_v1 = vld [vmem:[%s5455_s2 + $0x8] sm:$0xff]  ;;  %v212_v2 = vld [vmem:[%s5455_s2 + $0x10] sm:$0xff]  ;;  %s3042_s23 = sshll.u32 %s3037_s16, 3  ;;  %vm2200_vm0 = vcmask 1043456   ;;  %vm2175_vm1 = vcmask 31744  }
   0xe   : > { %v228_v3 = vand.u32 4294901760, %v210_v0  ;;  %v231_v4 = vand.u32 4294901760, %v211_v1  ;;  %v213_v5 = vld [vmem:[%s5455_s2 + $0x18] sm:$0xff]  ;;  %v234_v6 = vand.u32 4294901760, %v212_v2  ;;  %v214_v7 = vld [vmem:[%s5455_s2 + $0x20] sm:$0xff]  ;;  %v215_v8 = vld [vmem:[%s5455_s2 + $0x28] sm:$0xff] }
   0xf   : > { %v237_v9 = vand.u32 4294901760, %v213_v5  ;;  %v240_v10 = vand.u32 4294901760, %v214_v7  ;;  %v243_v11 = vand.u32 4294901760, %v215_v8  ;;  %v216_v12 = vld [vmem:[%s5455_s2 + $0x30] sm:$0xff]  ;;  %v217_v13 = vld [vmem:[%s5455_s2 + $0x38] sm:$0xff]  ;;  %v218_v18 = vld [vmem:[%s5455_s2 + $0x40] sm:$0xff] }
  0x10   : > { %v4604_v14 = vpack.c.bf16 %v231_v4, %v228_v3  ;;  %v4606_v15 = vsub.f32 %v210_v0, %v228_v3  ;;  %v4608_v16 = vsub.f32 %v211_v1, %v231_v4  ;;  %v246_v17 = vand.u32 4294901760, %v216_v12  ;;  %p190_p3 = scmp.lt.s32.totalorder %s3042_s23, 15  ;;  %v219_v26 = vld [vmem:[%s5455_s2 + $0x48] sm:$0xff]  ;;  %v220_v27 = vld [vmem:[%s5455_s2 + $0x50] sm:$0xff]  ;;  %v221_v36 = vld [vmem:[%s5455_s2 + $0x58] sm:$0xff] }
  0x11   : > { %v4613_v19 = vpack.c.bf16 %v237_v9, %v234_v6  ;;  %v249_v20 = vand.u32 4294901760, %v217_v13  ;;  %v4615_v21 = vsub.f32 %v212_v2, %v234_v6  ;;  %v4618_v22 = vpack.c.bf16 %v243_v11, %v240_v10  ;;  %v222_v56 = vld [vmem:[%s5455_s2 + $0x60] sm:$0xff]  ;;  %v223_v57 = vld [vmem:[%s5455_s2 + $0x68] sm:$0xff]  ;;  %v224_v1 = vld [vmem:[%s5455_s2 + $0x70] sm:$0xff] }
  0x12   : > { %4004 = vmatprep.subr.bf16.mxu1 %v4604_v14  ;;  %v5475_v23 = vand.u32 4294901760, %v4606_v15  ;;  %v5474_v24 = vand.u32 4294901760, %v4608_v16  ;;  %v4622_v25 = vsub.f32 %v213_v5, %v237_v9  ;;  %s5567_s23 = smov (!%p190_p3, %s3042_s23), 15  ;;  %v252_v30 = vand.u32 4294901760, %v218_v18 }
  0x13   : > { %4006 = vmatpush3.bf16.msra.mxu1 %v4604_v14  ;;  %v4633_v28 = vpack.c.bf16 %v249_v20, %v246_v17  ;;  %v5473_v29 = vand.u32 4294901760, %v4615_v21  ;;  %v4636_v31 = vsub.f32 %v214_v7, %v240_v10  ;;  %v4646_v35 = vsub.f32 %v215_v8, %v243_v11  ;;  %s3043_s17 = sshll.u32 %s5567_s23, 3  ;;  %v225_v11 = vld [vmem:[%s5455_s2 + $0x78] sm:$0xff] }
  0x14   : > { %4008 = vmatprep.subr.bf16.mxu1 %v4613_v19  ;;  %v392_v32 = vsub.f32 %v4606_v15, %v5475_v23  ;;  %v399_v33 = vsub.f32 %v4608_v16, %v5474_v24  ;;  %v5472_v34 = vand.u32 4294901760, %v4622_v25  ;;  %v255_v38 = vand.u32 4294901760, %v219_v26  ;;  %s4679_s20 = scalar_lea.vmem %s5453_s0, %s3043_s17  ;;  %s5433_s10 = scalar_lea.vmem %s5457_s4, %s3043_s17 }
  0x15   : > { %v406_v37 = vsub.f32 %v4615_v21, %v5473_v29  ;;  %v5471_v39 = vand.u32 4294901760, %v4636_v31  ;;  %v258_v40 = vand.u32 4294901760, %v220_v27  ;;  %v5470_v44 = vand.u32 4294901760, %v4646_v35  ;;  %v4709_v2 = vld [vmem:[%s4679_s20] sm:$0xff]  ;;  %v4719_v7 = vld [vmem:[%s4679_s20 + $0x8] sm:$0xff] }
  0x16   : > { %v393_v41 = vand.u32 4294901760, %v392_v32  ;;  %v400_v42 = vand.u32 4294901760, %v399_v33  ;;  %v413_v43 = vsub.f32 %v4622_v25, %v5472_v34  ;;  %v261_v47 = vand.u32 4294901760, %v221_v36 }
  0x17   : > { %4010 = vmatpush3.bf16.msra.mxu1 %v4613_v19  ;;  %v407_v45 = vand.u32 4294901760, %v406_v37  ;;  %v420_v46 = vsub.f32 %v4636_v31, %v5471_v39  ;;  %v4664_v48 = vsub.f32 %v216_v12, %v246_v17  ;;  %v427_v51 = vsub.f32 %v4646_v35, %v5470_v44 }
  0x18   : > { %4012 = vmatprep.subr.bf16.mxu1 %v4618_v22  ;;  %v4667_v49 = vpack.c.bf16 %v400_v42, %v393_v41  ;;  %v414_v50 = vand.u32 4294901760, %v413_v43  ;;  %v4672_v52 = vsub.f32 %v217_v13, %v249_v20  ;;  %v4681_v53 = vpack.c.bf16 %v255_v38, %v252_v30 }
  0x19   : > { %v421_v54 = vand.u32 4294901760, %v420_v46  ;;  %v5469_v55 = vand.u32 4294901760, %v4664_v48  ;;  %v428_v59 = vand.u32 4294901760, %v427_v51  ;;  %v4693_v60 = vpack.c.bf16 %v261_v47, %v258_v40 }
  0x1a   : > { %4036 = vmatprep.subr.bf16.mxu0 %v4667_v49  ;;  %v4691_v58 = vpack.c.bf16 %v414_v50, %v407_v45  ;;  %v5468_v61 = vand.u32 4294901760, %v4672_v52  ;;  %v4701_v63 = vsub.f32 %v218_v18, %v252_v30  ;;  %v4703_v0 = vsub.f32 %v219_v26, %v255_v38 }
  0x1b   : > { %4014 = vmatpush3.bf16.msra.mxu1 %v4618_v22  ;;  %4038 = vmatpush3.bf16.msra.mxu0 %v4667_v49  ;;  %v434_v62 = vsub.f32 %v4664_v48, %v5469_v55  ;;  %v4713_v3 = vpack.c.bf16 %v428_v59, %v421_v54  ;;  %v264_v5 = vand.u32 4294901760, %v222_v56  ;;  %v267_v6 = vand.u32 4294901760, %v223_v57 }
  0x1c   : > { %4016 = vmatprep.subr.bf16.mxu1 %v4633_v28  ;;  %4040 = vmatprep.subr.bf16.mxu0 %v4691_v58  ;;  %v441_v4 = vsub.f32 %v4672_v52, %v5468_v61  ;;  %v5467_v9 = vand.u32 4294901760, %v4701_v63  ;;  %v5466_v10 = vand.u32 4294901760, %v4703_v0  ;;  %v4726_v12 = vsub.f32 %v220_v27, %v258_v40 }
  0x1d   : > { %v435_v8 = vand.u32 4294901760, %v434_v62  ;;  %v270_v17 = vand.u32 4294901760, %v224_v1  ;;  %v4728_v18 = vsub.f32 %v221_v36, %v261_v47  ;;  %v4731_v20 = vand.u32 4294901760, %v4709_v2 }
  0x1e   : > { %v442_v13 = vand.u32 4294901760, %v441_v4  ;;  %v448_v26 = vsub.f32 %v4701_v63, %v5467_v9  ;;  %v455_v27 = vsub.f32 %v4703_v0, %v5466_v10  ;;  %v5462_v30 = vand.u32 4294901760, %v4726_v12 }
  0x1f   : > { %5510 = vst [vmem:[#allocation2_spill] sm:$0xff] %v4731_v20  ;;  %4018 = vmatpush3.bf16.msra.mxu1 %v4633_v28  ;;  %4042 = vmatpush3.bf16.msra.mxu0 %v4691_v58  ;;  %v4743_v32 = vand.u32 4294901760, %v4719_v7  ;;  %v273_v36 = vand.u32 4294901760, %v225_v11  ;;  %v5461_v37 = vand.u32 4294901760, %v4728_v18  ;;  %v4752_v38 = vsub.f32 %v4709_v2, %v4731_v20 }
  0x20   : > { %4020 = vmatprep.subr.bf16.mxu1 %v4681_v53  ;;  %4044 = vmatprep.subr.bf16.mxu0 %v4713_v3  ;;  %v4747_v33 = vpack.c.bf16 %v442_v13, %v435_v8  ;;  %v449_v40 = vand.u32 4294901760, %v448_v26  ;;  %v456_v41 = vand.u32 4294901760, %v455_v27  ;;  %v462_v42 = vsub.f32 %v4726_v12, %v5462_v30  ;;  %v4789_v13 = vld [vmem:[%s4679_s20 + $0x10] sm:$0xff] }
  0x21   : > { %v4759_v43 = vsub.f32 %v4719_v7, %v4743_v32  ;;  %3467 = vmatprep.mubr.f32.mxu0 %v4731_v20  ;;  %v469_v45 = vsub.f32 %v4728_v18, %v5461_v37  ;;  %v5458_v46 = vand.u32 4294901760, %v4752_v38  ;;  %v4766_v47 = vsub.f32 %v222_v56, %v264_v5 }
  0x22   : > { %5511 = vst [vmem:[#allocation3_spill] sm:$0xff] %v4747_v33  ;;  %v4770_v50 = vpack.c.bf16 %v267_v6, %v264_v5  ;;  %v4772_v51 = vpack.c.bf16 %v456_v41, %v449_v40  ;;  %v463_v54 = vand.u32 4294901760, %v462_v42  ;;  %v4774_v59 = vsub.f32 %v223_v57, %v267_v6  ;;  %v4796_v41 = vld [vmem:[%s4679_s20 + $0x18] sm:$0xff] }
  0x23   : > { %4022 = vmatpush3.bf16.msra.mxu1 %v4681_v53  ;;  %4046 = vmatpush3.bf16.msra.mxu0 %v4713_v3  ;;  %v470_v62 = vand.u32 4294901760, %v469_v45  ;;  %v311_v56 = vsub.f32 %v4752_v38, %v5458_v46  ;;  %v5460_v4 = vand.u32 4294901760, %v4766_v47  ;;  %v4782_v5 = vsub.f32 %v224_v1, %v270_v17  ;;  %v4807_v45 = vld [vmem:[%s4679_s20 + $0x20] sm:$0xff] }
  0x24   : > { %5512 = vst [vmem:[#allocation4_spill] sm:$0xff] %v4772_v51  ;;  %4024 = vmatprep.subr.bf16.mxu1 %v4693_v60  ;;  %4048 = vmatprep.subr.bf16.mxu0 %v4747_v33  ;;  %v5464_v8 = vand.u32 4294901760, %v4759_v43  ;;  %v5459_v57 = vand.u32 4294901760, %v4774_v59  ;;  %v4786_v6 = vsub.f32 %v225_v11, %v273_v36  ;;  %v4800_v1 = vpack.c.bf16 %v273_v36, %v270_v17 }
  0x25   : > { %v312_v26 = vand.u32 4294901760, %v311_v56  ;;  %v476_v27 = vsub.f32 %v4766_v47, %v5460_v4  ;;  %v5463_v40 = vand.u32 4294901760, %v4782_v5  ;;  %v4810_v56 = vld [vmem:[%s4679_s20 + $0x28] sm:$0xff]  ;;  %v4814_v46 = vpack.c.bf16 %v470_v62, %v463_v54  ;;  %v4832_v62 = vld [vmem:[%s4679_s20 + $0x30] sm:$0xff] }
  0x26   : > { %v483_v11 = vsub.f32 %v4774_v59, %v5459_v57  ;;  %v5465_v42 = vand.u32 4294901760, %v4786_v6  ;;  %v4820_v57 = vand.u32 4294901760, %v4789_v13  ;;  %v321_v4 = vsub.f32 %v4759_v43, %v5464_v8 }
  0x27   : > { %4026 = vmatpush3.bf16.msra.mxu1 %v4693_v60  ;;  %4050 = vmatpush3.bf16.msra.mxu0 %v4747_v33  ;;  %5513 = vst [vmem:[#allocation5_spill] sm:$0xff] %v4814_v46  ;;  %v477_v17 = vand.u32 4294901760, %v476_v27  ;;  %v490_v36 = vsub.f32 %v4782_v5, %v5463_v40  ;;  %v4829_v54 = vand.u32 4294901760, %v4796_v41  ;;  %v4842_v40 = vand.u32 4294901760, %v4810_v56 }
  0x28   : > { %4028 = vmatprep.subr.bf16.mxu1 %v4770_v50  ;;  %4052 = vmatprep.subr.bf16.mxu0 %v4772_v51  ;;  %5514 = vst [vmem:[#allocation6_spill] sm:$0xff] %v4820_v57  ;;  %v484_v37 = vand.u32 4294901760, %v483_v11  ;;  %v497_v30 = vsub.f32 %v4786_v6, %v5465_v42  ;;  %v4836_v27 = vsub.f32 %v4789_v13, %v4820_v57  ;;  %v4845_v11 = vld [vmem:[%s4679_s20 + $0x38] sm:$0xff] }
  0x29   : > { %3423 = vmatprep.mubr.f32.mxu1 %v312_v26  ;;  %5515 = vst [vmem:[#allocation7_spill] sm:$0xff] %v4829_v54  ;;  %v4839_v26 = vand.u32 4294901760, %v4807_v45  ;;  %5518 = vst [vmem:[#allocation10_spill] sm:$0xff] %v4842_v40  ;;  %v491_v42 = vand.u32 4294901760, %v490_v36  ;;  %v4853_v9 = vsub.f32 %v4796_v41, %v4829_v54  ;;  %v4871_v44 = vand.u32 4294901760, %v4845_v11 }
  0x2a   : > { %5516 = vst [vmem:[#allocation8_spill] sm:$0xff] %v4836_v27  ;;  %v4849_v8 = vpack.c.bf16 %v484_v37, %v477_v17  ;;  %v498_v10 = vand.u32 4294901760, %v497_v30  ;;  %v5476_v61 = vand.u32 4294901760, %v4836_v27  ;;  %v4864_v37 = vsub.f32 %v4810_v56, %v4842_v40 }
  0x2b   : > { %5517 = vst [vmem:[#allocation9_spill] sm:$0xff] %v4839_v26  ;;  %4030 = vmatpush3.bf16.msra.mxu1 %v4770_v50  ;;  %4054 = vmatpush3.bf16.msra.mxu0 %v4772_v51  ;;  %5519 = vst [vmem:[#allocation11_spill] sm:$0xff] %v4853_v9  ;;  %v4860_v55 = vsub.f32 %v4807_v45, %v4839_v26  ;;  %v4867_v30 = vand.u32 4294901760, %v4832_v62  ;;  %v322_v17 = vand.u32 4294901760, %v321_v4  ;;  %v5481_v36 = vand.u32 4294901760, %v4853_v9 }
  0x2c   : > { %4032 = vmatprep.subr.bf16.mxu1 %v4800_v1  ;;  %4056 = vmatprep.subr.bf16.mxu0 %v4814_v46  ;;  %5521 = vst [vmem:[#allocation13_spill] sm:$0xff] %v4871_v44  ;;  %v331_v39 = vsub.f32 %v4836_v27, %v5476_v61  ;;  %v4889_v23 = vsub.f32 %v4845_v11, %v4871_v44 }
  0x2d   : > { %5520 = vst [vmem:[#allocation12_spill] sm:$0xff] %v4867_v30  ;;  %v5492_v34 = vand.u32 4294901760, %v4860_v55  ;;  %v4880_v24 = vsub.f32 %v4832_v62, %v4867_v30  ;;  %v341_v4 = vsub.f32 %v4853_v9, %v5481_v36  ;;  %v4893_v61 = vpack.c.bf16 %v498_v10, %v491_v42 }
  0x2e   : > { %v332_v29 = vand.u32 4294901760, %v331_v39  ;;  %v1169_v36 = vmul.f32 %v4709_v2, %v4709_v2  ;;  %v5523_v9 = vand.u32 4294901760, %v4864_v37  ;;  %v5490_v33 = vand.u32 4294901760, %v4889_v23 }
  0x2f   : > { %4034 = vmatpush3.bf16.msra.mxu1 %v4800_v1  ;;  %4058 = vmatpush3.bf16.msra.mxu0 %v4814_v46  ;;  %5522 = vst [vmem:[#allocation14_spill] sm:$0xff] %v4893_v61  ;;  %v351_v20 = vsub.f32 %v4860_v55, %v5492_v34  ;;  %v5491_v46 = vand.u32 4294901760, %v4880_v24  ;;  %v342_v51 = vand.u32 4294901760, %v341_v4  ;;  %v4913_v2 = vpack.c.bf16 %v4608_v16, %v4606_v15 }
  0x30   : > { %4060 = vmatprep.subr.bf16.mxu0 %v4849_v8  ;;  %4196 = vmatprep.subr.bf16.mxu1 %v4604_v14  ;;  %v361_v27 = vsub.f32 %v4864_v37, %v5523_v9  ;;  %v4907_v39 = vand.u32 4294901760, %v1169_v36  ;;  %v381_v4 = vsub.f32 %v4889_v23, %v5490_v33  ;;  %v5525_v33 = vand.u32 4294901760, %v4608_v16 }
  0x31   : > { %v352_v10 = vand.u32 4294901760, %v351_v20  ;;  %v371_v9 = vsub.f32 %v4880_v24, %v5491_v46  ;;  %v4931_v20 = vpack.c.bf16 %v4622_v25, %v4615_v21  ;;  %v1170_v34 = vmul.f32 %v4719_v7, %v4719_v7 }
  0x32   : > { %3424 = vmatmul.mubr.f32.vlgmr.msra.gmra.mrb[0].mxu1 %v322_v17  ;;  %v4919_v42 = vsub.f32 %v1169_v36, %v4907_v39  ;;  %v362_v17 = vand.u32 4294901760, %v361_v27  ;;  %v5524_v36 = vand.u32 4294901760, %v4606_v15  ;;  %v4957_v16 = vpack.c.bf16 %v4646_v35, %v4636_v31 }
  0x33   : > { %4062 = vmatpush3.bf16.msra.mxu0 %v4849_v8  ;;  %4198 = vmatpush3.bf16.msra.mxu1 %v4604_v14 }
  0x34   : > { %4064 = vmatprep.subr.bf16.mxu0 %v4893_v61  ;;  %4200 = vmatprep.subr.bf16.mxu1 %v4613_v19  ;;  %v4940_v46 = vpack.c.bf16 %v5525_v33, %v5524_v36  ;;  %v1171_v33 = vmul.f32 %v4789_v13, %v4789_v13  ;;  %v5531_v36 = vand.u32 4294901760, %v4672_v52  ;;  %v1172_v13 = vmul.f32 %v4796_v41, %v4796_v41 }
  0x35   : > { %3426 = vmatprep.mubr.f32.mxu1 %v332_v29  ;;  %v5495_v29 = vand.u32 4294901760, %v4919_v42  ;;  %v4997_v41 = vpack.c.bf16 %v4672_v52, %v4664_v48 }
  0x36   : > { %3427 = vmatmul.mubr.f32.gmra.mrb[2].mxu1 %v342_v51  ;;  %v372_v51 = vand.u32 4294901760, %v371_v9  ;;  %v5527_v9 = vand.u32 4294901760, %v4622_v25  ;;  %v5529_v25 = vand.u32 4294901760, %v4646_v35  ;;  %v5533_v35 = vand.u32 4294901760, %v4703_v0 }
  0x37   : > { %4066 = vmatpush3.bf16.msra.mxu0 %v4893_v61  ;;  %4202 = vmatpush3.bf16.msra.mxu1 %v4613_v19  ;;  %v1261_v27 = vsub.f32 %v4919_v42, %v5495_v29  ;;  %v382_v61 = vand.u32 4294901760, %v381_v4  ;;  %v5530_v4 = vand.u32 4294901760, %v4664_v48  ;;  %v1173_v48 = vmul.f32 %v4807_v45, %v4807_v45 }
  0x38   : > { %4068 = vmatprep.subr.bf16.mxu0 %v4913_v2  ;;  %4204 = vmatprep.subr.bf16.mxu1 %v4618_v22  ;;  %v5030_v45 = vpack.c.bf16 %v4703_v0, %v4701_v63  ;;  %v5055_v0 = vpack.c.bf16 %v4728_v18, %v4726_v12 }
  0x39   : > { %3429 = vmatprep.mubr.f32.mxu1 %v352_v10  ;;  %v5526_v10 = vand.u32 4294901760, %v4615_v21  ;;  %v1262_v7 = vand.u32 4294901760, %v1261_v27  ;;  %v5528_v21 = vand.u32 4294901760, %v4636_v31  ;;  %v5532_v31 = vand.u32 4294901760, %v4701_v63 }
  0x3a   : > { %3468 = vmatmul.mubr.f32.vlgmr.msra.gmra.mrb[0].mxu0 %v4743_v32  ;;  %3430 = vmatmul.mubr.f32.gmra.mrb[4].mxu1 %v362_v17  ;;  %v5534_v27 = vand.u32 4294901760, %v4726_v12  ;;  %v1176_v63 = vmul.f32 %v4845_v11, %v4845_v11 }
  0x3b   : > { %4070 = vmatpush3.bf16.msra.mxu0 %v4913_v2  ;;  %4206 = vmatpush3.bf16.msra.mxu1 %v4618_v22  ;;  %v4951_v15 = vpack.c.bf16 %v5527_v9, %v5526_v10  ;;  %v4966_v17 = vpack.c.bf16 %v5529_v25, %v5528_v21  ;;  %v4972_v10 = vpack.c.bf16 %v5531_v36, %v5530_v4  ;;  %v4974_v9 = vand.u32 4294901760, %v1170_v34 }
  0x3c   : > { %4072 = vmatprep.subr.bf16.mxu0 %v4931_v20  ;;  %4208 = vmatprep.subr.bf16.mxu1 %v4633_v28  ;;  %v5535_v21 = vand.u32 4294901760, %v4728_v18  ;;  %v5536_v25 = vand.u32 4294901760, %v4766_v47  ;;  %v5537_v4 = vand.u32 4294901760, %v4774_v59  ;;  %v5071_v12 = vand.u32 4294901760, %v1176_v63 }
  0x3d   : > { %3432 = vmatprep.mubr.f32.mxu1 %v372_v51  ;;  %3470 = vmatprep.mubr.f32.mxu0 %v4820_v57  ;;  %v4985_v51 = vpack.c.bf16 %v5533_v35, %v5532_v31  ;;  %v5538_v31 = vand.u32 4294901760, %v4782_v5  ;;  %v5539_v35 = vand.u32 4294901760, %v4786_v6  ;;  %v5018_v52 = vsub.f32 %v1170_v34, %v4974_v9 }
  0x3e   : > { %3433 = vmatmul.mubr.f32.gmra.mrb[6].mxu1 %v382_v61  ;;  %3471 = vmatmul.mubr.f32.gmra.mrb[2].mxu0 %v4829_v54  ;;  %v4991_v61 = vpack.c.bf16 %v5535_v21, %v5534_v27  ;;  %v5003_v36 = vpack.c.bf16 %v5537_v4, %v5536_v25  ;;  %v5012_v21 = vand.u32 4294901760, %v1171_v33  ;;  %v5020_v25 = vand.u32 4294901760, %v1172_v13 }
  0x3f   : > { %4074 = vmatpush3.bf16.msra.mxu0 %v4931_v20  ;;  %4210 = vmatpush3.bf16.msra.mxu1 %v4633_v28  ;;  %v5009_v27 = vpack.c.bf16 %v5539_v35, %v5538_v31  ;;  %v1174_v4 = vmul.f32 %v4810_v56, %v4810_v56  ;;  %v1175_v56 = vmul.f32 %v4832_v62, %v4832_v62  ;;  %v5500_v31 = vand.u32 4294901760, %v5018_v52 }
  0x40   : > { %4076 = vmatprep.subr.bf16.mxu0 %v4957_v16  ;;  %4212 = vmatprep.subr.bf16.mxu1 %v4681_v53  ;;  %v5034_v34 = vsub.f32 %v1171_v33, %v5012_v21  ;;  %v5043_v35 = vsub.f32 %v1172_v13, %v5020_v25  ;;  %v5079_v18 = vpack.c.bf16 %v4774_v59, %v4766_v47 }
  0x41   : > { %3473 = vmatprep.mubr.f32.mxu0 %v4839_v26  ;;  %3687 = vmatprep.mubr.f32.mxu1 %v1262_v7  ;;  %v5036_v7 = vand.u32 4294901760, %v1173_v48  ;;  %v5045_v29 = vand.u32 4294901760, %v1174_v4  ;;  %v5062_v11 = vand.u32 4294901760, %v1175_v56  ;;  %v1271_v13 = vsub.f32 %v5018_v52, %v5500_v31 }
  0x42   : > { %3474 = vmatmul.mubr.f32.gmra.mrb[4].mxu0 %v4842_v40  ;;  %v5509_v62 = vand.u32 4294901760, %v5034_v34  ;;  %v5540_v40 = vand.u32 4294901760, %v5043_v35  ;;  %v5093_v57 = vsub.f32 %v1176_v63, %v5071_v12  ;;  %v5101_v47 = vpack.c.bf16 %v4786_v6, %v4782_v5 }
  0x43   : > { %4078 = vmatpush3.bf16.msra.mxu0 %v4957_v16  ;;  %4214 = vmatpush3.bf16.msra.mxu1 %v4681_v53  ;;  %v5060_v33 = vsub.f32 %v1173_v48, %v5036_v7  ;;  %v5086_v31 = vsub.f32 %v1175_v56, %v5062_v11 }
  0x44   : > { %4080 = vmatprep.subr.bf16.mxu0 %v4997_v41  ;;  %4216 = vmatprep.subr.bf16.mxu1 %v4693_v60  ;;  %v1281_v48 = vsub.f32 %v5034_v34, %v5509_v62  ;;  %v1291_v26 = vsub.f32 %v5043_v35, %v5540_v40  ;;  %v1330_v62 = vand.u32 4294901760, %v5093_v57 }
  0x45   : > { %3476 = vmatprep.mubr.f32.mxu0 %v4867_v30  ;;  %v5069_v30 = vsub.f32 %v1174_v4, %v5045_v29  ;;  %v1300_v4 = vand.u32 4294901760, %v5060_v33  ;;  %v1320_v56 = vand.u32 4294901760, %v5086_v31 }
  0x46   : > { %3477 = vmatmul.mubr.f32.gmra.mrb[6].mxu0 %v4871_v44  ;;  %v1272_v44 = vand.u32 4294901760, %v1271_v13  ;;  %v1282_v59 = vand.u32 4294901760, %v1281_v48  ;;  %v1292_v63 = vand.u32 4294901760, %v1291_v26  ;;  %v1331_v26 = vsub.f32 %v5093_v57, %v1330_v62 }
  0x47   : > { %4082 = vmatpush3.bf16.msra.mxu0 %v4997_v41  ;;  %4218 = vmatpush3.bf16.msra.mxu1 %v4693_v60  ;;  %v1310_v54 = vand.u32 4294901760, %v5069_v30  ;;  %v1301_v40 = vsub.f32 %v5060_v33, %v1300_v4 }
  0x48   : > { %4084 = vmatprep.subr.bf16.mxu0 %v5030_v45  ;;  %4220 = vmatprep.subr.bf16.mxu1 %v4770_v50  ;;  %v1332_v48 = vand.u32 4294901760, %v1331_v26 }
  0x49   : > { %3511 = vmatprep.mubr.f32.mxu0 %v4752_v38  ;;  %v1311_v13 = vsub.f32 %v5069_v30, %v1310_v54  ;;  %v1302_v5 = vand.u32 4294901760, %v1301_v40  ;;  %v5542_v40 = vld [vmem:[#allocation8_spill] sm:$0xff] }
  0x4b   : > { %4086 = vmatpush3.bf16.msra.mxu0 %v5030_v45  ;;  %4222 = vmatpush3.bf16.msra.mxu1 %v4770_v50  ;;  %v1312_v6 = vand.u32 4294901760, %v1311_v13  ;;  %v5546_v13 = vand.u32 4294901760, %v4752_v38  ;;  %v5548_v38 = vand.u32 4294901760, %v4759_v43 }
  0x4c   : > { %4088 = vmatprep.subr.bf16.mxu0 %v5055_v0  ;;  %4224 = vmatprep.subr.bf16.mxu1 %v4800_v1 }
  0x4f   : > { %4090 = vmatpush3.bf16.msra.mxu0 %v5055_v0  ;;  %4226 = vmatpush3.bf16.msra.mxu1 %v4800_v1 }
  0x50   : > { %4092 = vmatprep.subr.bf16.mxu0 %v5079_v18  ;;  %4228 = vmatprep.subr.bf16.mxu1 %v4667_v49 }
  0x52   : > { %3688 = vmatmul.mubr.f32.vlgmr.msra.gmra.mrb[8].mxu1 %v1272_v44  ;;  %v1321_v44 = vsub.f32 %v5086_v31, %v1320_v56 }
  0x53   : > { %4094 = vmatpush3.bf16.msra.mxu0 %v5079_v18  ;;  %4230 = vmatpush3.bf16.msra.mxu1 %v4667_v49 }
  0x54   : > { %4096 = vmatprep.subr.bf16.mxu0 %v5101_v47  ;;  %4232 = vmatprep.subr.bf16.mxu1 %v4691_v58  ;;  %v1322_v49 = vand.u32 4294901760, %v1321_v44  ;;  %v5564_v44 = vand.u32 4294901760, %v5034_v34 }
  0x55   : > { %3690 = vmatprep.mubr.f32.mxu1 %v1282_v59  ;;  %v5541_v59 = vld [vmem:[#allocation3_spill] sm:$0xff] }
  0x56   : > { %3691 = vmatmul.mubr.f32.gmra.mrb[10].mxu1 %v1292_v63  ;;  %v5544_v63 = vld [vmem:[#allocation4_spill] sm:$0xff] }
  0x57   : > { %4098 = vmatpush3.bf16.msra.mxu0 %v5101_v47  ;;  %4234 = vmatpush3.bf16.msra.mxu1 %v4691_v58  ;;  %v5543_v58 = vld [vmem:[#allocation11_spill] sm:$0xff] }
  0x58   : > { %4100 = vmatprep.subr.bf16.mxu0 %v4604_v14  ;;  %4236 = vmatprep.subr.bf16.mxu1 %v4713_v3 }
  0x59   : > { %3693 = vmatprep.mubr.f32.mxu1 %v1302_v5  ;;  %v5547_v5 = vld [vmem:[#allocation14_spill] sm:$0xff] }
  0x5a   : > { %3512 = vmatmul.mubr.f32.vlgmr.msra.gmra.mrb[0].mxu0 %v4759_v43  ;;  %3694 = vmatmul.mubr.f32.gmra.mrb[12].mxu1 %v1312_v6  ;;  %v5551_v43 = vand.u32 4294901760, %v4860_v55  ;;  %v5565_v6 = vand.u32 4294901760, %v5043_v35 }
  0x5b   : > { %4102 = vmatpush3.bf16.msra.mxu0 %v4604_v14  ;;  %4238 = vmatpush3.bf16.msra.mxu1 %v4713_v3  ;;  %v5545_v3 = vld [vmem:[#allocation5_spill] sm:$0xff] }
  0x5c   : > { %4104 = vmatprep.subr.bf16.mxu0 %v4613_v19  ;;  %4240 = vmatprep.subr.bf16.mxu1 %v5541_v59 }
  0x5d   : > { %3514 = vmatprep.mubr.f32.mxu0 %v5542_v40  ;;  %3696 = vmatprep.mubr.f32.mxu1 %v1322_v49 }
  0x5e   : > { %3515 = vmatmul.mubr.f32.gmra.mrb[2].mxu0 %v5543_v58  ;;  %3697 = vmatmul.mubr.f32.gmra.mrb[14].mxu1 %v1332_v48 }
  0x5f   : > { %4106 = vmatpush3.bf16.msra.mxu0 %v4613_v19  ;;  %4242 = vmatpush3.bf16.msra.mxu1 %v5541_v59 }
  0x60   : > { %4108 = vmatprep.subr.bf16.mxu0 %v4618_v22  ;;  %4244 = vmatprep.subr.bf16.mxu1 %v5544_v63 }
  0x61   : > { %3517 = vmatprep.mubr.f32.mxu0 %v4860_v55  ;;  %3731 = vmatprep.mubr.f32.mxu1 %v4907_v39  ;;  %v5555_v55 = vld [vmem:[#allocation2_spill] sm:$0xff] }
  0x62   : > { %3518 = vmatmul.mubr.f32.gmra.mrb[4].mxu0 %v4864_v37 }
  0x63   : > { %4110 = vmatpush3.bf16.msra.mxu0 %v4618_v22  ;;  %4246 = vmatpush3.bf16.msra.mxu1 %v5544_v63 }
  0x64   : > { %4112 = vmatprep.subr.bf16.mxu0 %v4633_v28  ;;  %4248 = vmatprep.subr.bf16.mxu1 %v5545_v3 }
  0x65   : > { %3520 = vmatprep.mubr.f32.mxu0 %v4880_v24 }
  0x66   : > { %3521 = vmatmul.mubr.f32.gmra.mrb[6].mxu0 %v4889_v23 }
  0x67   : > { %4114 = vmatpush3.bf16.msra.mxu0 %v4633_v28  ;;  %4250 = vmatpush3.bf16.msra.mxu1 %v5545_v3 }
  0x68   : > { %4116 = vmatprep.subr.bf16.mxu0 %v4681_v53  ;;  %4252 = vmatprep.subr.bf16.mxu1 %v4849_v8 }
  0x69   : > { %3555 = vmatprep.mubr.f32.mxu0 %v5546_v13 }
  0x6b   : > { %4118 = vmatpush3.bf16.msra.mxu0 %v4681_v53  ;;  %4254 = vmatpush3.bf16.msra.mxu1 %v4849_v8  ;;  %v5549_v8 = vand.u32 4294901760, %v5542_v40 }
  0x6c   : > { %4120 = vmatprep.subr.bf16.mxu0 %v4693_v60  ;;  %4256 = vmatprep.subr.bf16.mxu1 %v5547_v5 }
  0x6f   : > { %4122 = vmatpush3.bf16.msra.mxu0 %v4693_v60  ;;  %4258 = vmatpush3.bf16.msra.mxu1 %v5547_v5 }
  0x70   : > { %4124 = vmatprep.subr.bf16.mxu0 %v4770_v50  ;;  %4260 = vmatprep.subr.bf16.mxu1 %v4913_v2 }
  0x72   : > { %3732 = vmatmul.mubr.f32.vlgmr.msra.gmra.mrb[8].mxu1 %v4974_v9 }
  0x73   : > { %4126 = vmatpush3.bf16.msra.mxu0 %v4770_v50  ;;  %4262 = vmatpush3.bf16.msra.mxu1 %v4913_v2  ;;  %v5550_v2 = vand.u32 4294901760, %v5543_v58 }
  0x74   : > { %4128 = vmatprep.subr.bf16.mxu0 %v4800_v1  ;;  %4264 = vmatprep.subr.bf16.mxu1 %v4931_v20 }
  0x75   : > { %3734 = vmatprep.mubr.f32.mxu1 %v5012_v21 }
  0x76   : > { %3735 = vmatmul.mubr.f32.gmra.mrb[10].mxu1 %v5020_v25 }
  0x77   : > { %4130 = vmatpush3.bf16.msra.mxu0 %v4800_v1  ;;  %4266 = vmatpush3.bf16.msra.mxu1 %v4931_v20  ;;  %v5552_v20 = vand.u32 4294901760, %v4864_v37  ;;  %v5558_v37 = vld [vmem:[#allocation9_spill] sm:$0xff] }
  0x78   : > { %4132 = vmatprep.subr.bf16.mxu0 %v4940_v46  ;;  %4268 = vmatprep.subr.bf16.mxu1 %v4957_v16 }
  0x79   : > { %3737 = vmatprep.mubr.f32.mxu1 %v5036_v7 }
  0x7a   : > { %3556 = vmatmul.mubr.f32.vlgmr.msra.gmra.mrb[0].mxu0 %v5548_v38  ;;  %3738 = vmatmul.mubr.f32.gmra.mrb[12].mxu1 %v5045_v29 }
  0x7b   : > { %4134 = vmatpush3.bf16.msra.mxu0 %v4940_v46  ;;  %4270 = vmatpush3.bf16.msra.mxu1 %v4957_v16  ;;  %v5553_v16 = vand.u32 4294901760, %v4880_v24  ;;  %v5557_v24 = vld [vmem:[#allocation7_spill] sm:$0xff] }
  0x7c   : > { %4136 = vmatprep.subr.bf16.mxu0 %v4951_v15  ;;  %4272 = vmatprep.subr.bf16.mxu1 %v4997_v41 }
  0x7d   : > { %3558 = vmatprep.mubr.f32.mxu0 %v5549_v8  ;;  %3740 = vmatprep.mubr.f32.mxu1 %v5062_v11 }
  0x7e   : > { %3559 = vmatmul.mubr.f32.gmra.mrb[2].mxu0 %v5550_v2  ;;  %3741 = vmatmul.mubr.f32.gmra.mrb[14].mxu1 %v5071_v12 }
  0x7f   : > { %4138 = vmatpush3.bf16.msra.mxu0 %v4951_v15  ;;  %4274 = vmatpush3.bf16.msra.mxu1 %v4997_v41  ;;  %v5554_v41 = vand.u32 4294901760, %v4889_v23  ;;  %v5556_v23 = vld [vmem:[#allocation6_spill] sm:$0xff] }
  0x80   : > { %4140 = vmatprep.subr.bf16.mxu0 %v4966_v17  ;;  %4276 = vmatprep.subr.bf16.mxu1 %v5030_v45 }
  0x81   : > { %3561 = vmatprep.mubr.f32.mxu0 %v5551_v43  ;;  %3775 = vmatprep.mubr.f32.mxu1 %v4919_v42 }
  0x82   : > { %3562 = vmatmul.mubr.f32.gmra.mrb[4].mxu0 %v5552_v20 }
  0x83   : > { %4142 = vmatpush3.bf16.msra.mxu0 %v4966_v17  ;;  %4278 = vmatpush3.bf16.msra.mxu1 %v5030_v45  ;;  %v5559_v45 = vand.u32 4294901760, %v4919_v42  ;;  %v5563_v42 = vand.u32 4294901760, %v5018_v52 }
  0x84   : > { %4144 = vmatprep.subr.bf16.mxu0 %v4972_v10  ;;  %4280 = vmatprep.subr.bf16.mxu1 %v5055_v0 }
  0x85   : > { %3564 = vmatprep.mubr.f32.mxu0 %v5553_v16 }
  0x86   : > { %3565 = vmatmul.mubr.f32.gmra.mrb[6].mxu0 %v5554_v41 }
  0x87   : > { %4146 = vmatpush3.bf16.msra.mxu0 %v4972_v10  ;;  %4282 = vmatpush3.bf16.msra.mxu1 %v5055_v0  ;;  %v5560_v0 = vld [vmem:[#allocation10_spill] sm:$0xff] }
  0x88   : > { %4148 = vmatprep.subr.bf16.mxu0 %v4985_v51  ;;  %4284 = vmatprep.subr.bf16.mxu1 %v5079_v18 }
  0x89   : > { %3599 = vmatprep.mubr.f32.mxu0 %v5555_v55 }
  0x8b   : > { %4150 = vmatpush3.bf16.msra.mxu0 %v4985_v51  ;;  %4286 = vmatpush3.bf16.msra.mxu1 %v5079_v18  ;;  %v5561_v18 = vld [vmem:[#allocation12_spill] sm:$0xff] }
  0x8c   : > { %4152 = vmatprep.subr.bf16.mxu0 %v4991_v61  ;;  %4288 = vmatprep.subr.bf16.mxu1 %v5101_v47 }
  0x8f   : > { %4154 = vmatpush3.bf16.msra.mxu0 %v4991_v61  ;;  %4290 = vmatpush3.bf16.msra.mxu1 %v5101_v47  ;;  %v5562_v47 = vld [vmem:[#allocation13_spill] sm:$0xff] }
  0x90   : > { %4156 = vmatprep.subr.bf16.mxu0 %v5003_v36  ;;  %4292 = vmatprep.subr.bf16.mxu1 %v4604_v14 }
  0x92   : > { %3776 = vmatmul.mubr.f32.vlgmr.msra.gmra.mrb[8].mxu1 %v5018_v52 }
  0x93   : > { %4158 = vmatpush3.bf16.msra.mxu0 %v5003_v36  ;;  %4294 = vmatpush3.bf16.msra.mxu1 %v4604_v14 }
  0x94   : > { %4160 = vmatprep.subr.bf16.mxu0 %v5009_v27  ;;  %4296 = vmatprep.subr.bf16.mxu1 %v4613_v19 }
  0x95   : > { %3778 = vmatprep.mubr.f32.mxu1 %v5034_v34 }
  0x96   : > { %3779 = vmatmul.mubr.f32.gmra.mrb[10].mxu1 %v5043_v35 }
  0x97   : > { %4162 = vmatpush3.bf16.msra.mxu0 %v5009_v27  ;;  %4298 = vmatpush3.bf16.msra.mxu1 %v4613_v19 }
  0x98   : > { %4164 = vmatprep.subr.bf16.mxu0 %v4604_v14  ;;  %4300 = vmatprep.subr.bf16.mxu1 %v4618_v22 }
  0x99   : > { %3781 = vmatprep.mubr.f32.mxu1 %v5060_v33 }
  0x9a   : > { %3600 = vmatmul.mubr.f32.vlgmr.msra.gmra.mrb[0].mxu0 %v4743_v32  ;;  %3782 = vmatmul.mubr.f32.gmra.mrb[12].mxu1 %v5069_v30 }
  0x9b   : > { %4166 = vmatpush3.bf16.msra.mxu0 %v4604_v14  ;;  %4302 = vmatpush3.bf16.msra.mxu1 %v4618_v22 }
  0x9c   : > { %4168 = vmatprep.subr.bf16.mxu0 %v4613_v19  ;;  %4304 = vmatprep.subr.bf16.mxu1 %v4633_v28 }
  0x9d   : > { %3602 = vmatprep.mubr.f32.mxu0 %v5556_v23  ;;  %3784 = vmatprep.mubr.f32.mxu1 %v5086_v31 }
  0x9e   : > { %3603 = vmatmul.mubr.f32.gmra.mrb[2].mxu0 %v5557_v24  ;;  %3785 = vmatmul.mubr.f32.gmra.mrb[14].mxu1 %v5093_v57 }
  0x9f   : > { %4170 = vmatpush3.bf16.msra.mxu0 %v4613_v19  ;;  %4306 = vmatpush3.bf16.msra.mxu1 %v4633_v28 }
  0xa0   : > { %4172 = vmatprep.subr.bf16.mxu0 %v4618_v22  ;;  %4308 = vmatprep.subr.bf16.mxu1 %v4681_v53 }
  0xa1   : > { %3605 = vmatprep.mubr.f32.mxu0 %v5558_v37  ;;  %3819 = vmatprep.mubr.f32.mxu1 %v5559_v45 }
  0xa2   : > { %3606 = vmatmul.mubr.f32.gmra.mrb[4].mxu0 %v5560_v0 }
  0xa3   : > { %4174 = vmatpush3.bf16.msra.mxu0 %v4618_v22  ;;  %4310 = vmatpush3.bf16.msra.mxu1 %v4681_v53 }
  0xa4   : > { %4176 = vmatprep.subr.bf16.mxu0 %v4633_v28  ;;  %4312 = vmatprep.subr.bf16.mxu1 %v4693_v60 }
  0xa5   : > { %3608 = vmatprep.mubr.f32.mxu0 %v5561_v18 }
  0xa6   : > { %3609 = vmatmul.mubr.f32.gmra.mrb[6].mxu0 %v5562_v47 }
  0xa7   : > { %4178 = vmatpush3.bf16.msra.mxu0 %v4633_v28  ;;  %4314 = vmatpush3.bf16.msra.mxu1 %v4693_v60 }
  0xa8   : > { %4180 = vmatprep.subr.bf16.mxu0 %v4681_v53  ;;  %4316 = vmatprep.subr.bf16.mxu1 %v4770_v50 }
  0xa9   : > { %3643 = vmatprep.mubr.f32.mxu0 %v5555_v55 }
  0xab   : > { %4182 = vmatpush3.bf16.msra.mxu0 %v4681_v53  ;;  %4318 = vmatpush3.bf16.msra.mxu1 %v4770_v50 }
  0xac   : > { %4184 = vmatprep.subr.bf16.mxu0 %v4693_v60  ;;  %4320 = vmatprep.subr.bf16.mxu1 %v4800_v1 }
  0xaf   : > { %4186 = vmatpush3.bf16.msra.mxu0 %v4693_v60  ;;  %4322 = vmatpush3.bf16.msra.mxu1 %v4800_v1 }
  0xb0   : > { %4188 = vmatprep.subr.bf16.mxu0 %v4770_v50  ;;  %4324 = vmatprep.subr.bf16.mxu1 %v4940_v46 }
  0xb2   : > { %3820 = vmatmul.mubr.f32.vlgmr.msra.gmra.mrb[8].mxu1 %v5563_v42 }
  0xb3   : > { %4190 = vmatpush3.bf16.msra.mxu0 %v4770_v50  ;;  %4326 = vmatpush3.bf16.msra.mxu1 %v4940_v46 }
  0xb4   : > { %4192 = vmatprep.subr.bf16.mxu0 %v4800_v1  ;;  %4328 = vmatprep.subr.bf16.mxu1 %v4951_v15 }
  0xb5   : > { %3822 = vmatprep.mubr.f32.mxu1 %v5564_v44 }
  0xb6   : > { %3823 = vmatmul.mubr.f32.gmra.mrb[10].mxu1 %v5565_v6 }
  0xb7   : > { %4194 = vmatpush3.bf16.msra.mxu0 %v4800_v1  ;;  %4330 = vmatpush3.bf16.msra.mxu1 %v4951_v15 }
  0xb8   : > { %4332 = vmatprep.subr.bf16.mxu1 %v4966_v17  ;;  %3825 = vmatprep.mubr.f32.mxu1 %v1300_v4 }
  0xba   : > { %3644 = vmatmul.mubr.f32.vlgmr.msra.gmra.mrb[0].mxu0 %v4743_v32  ;;  %3826 = vmatmul.mubr.f32.gmra.mrb[12].mxu1 %v1310_v54 }
  0xbb   : > { %4334 = vmatpush3.bf16.msra.mxu1 %v4966_v17  ;;  %3646 = vmatprep.mubr.f32.mxu0 %v5556_v23 }
  0xbc   : > { %4336 = vmatprep.subr.bf16.mxu1 %v4972_v10  ;;  %3828 = vmatprep.mubr.f32.mxu1 %v1320_v56 }
  0xbe   : > { %3647 = vmatmul.mubr.f32.gmra.mrb[2].mxu0 %v5557_v24  ;;  %3829 = vmatmul.mubr.f32.gmra.mrb[14].mxu1 %v1330_v62 }
  0xbf   : > { %4338 = vmatpush3.bf16.msra.mxu1 %v4972_v10  ;;  %3649 = vmatprep.mubr.f32.mxu0 %v5558_v37 }
  0xc0   : > { %4340 = vmatprep.subr.bf16.mxu1 %v4985_v51  ;;  %3863 = vmatprep.mubr.f32.mxu1 %v4907_v39 }
  0xc2   : > { %3650 = vmatmul.mubr.f32.gmra.mrb[4].mxu0 %v5560_v0 }
  0xc3   : > { %4342 = vmatpush3.bf16.msra.mxu1 %v4985_v51  ;;  %3652 = vmatprep.mubr.f32.mxu0 %v5561_v18 }
  0xc4   : > { %4344 = vmatprep.subr.bf16.mxu1 %v4991_v61 }
  0xc6   : > { %3653 = vmatmul.mubr.f32.gmra.mrb[6].mxu0 %v5562_v47 }
  0xc7   : > { %4346 = vmatpush3.bf16.msra.mxu1 %v4991_v61 }
  0xc8   : > { %4348 = vmatprep.subr.bf16.mxu1 %v5003_v36 }
  0xcb   : > { %4350 = vmatpush3.bf16.msra.mxu1 %v5003_v36 }
  0xcc   : > { %4352 = vmatprep.subr.bf16.mxu1 %v5009_v27 }
  0xcf   : > { %4354 = vmatpush3.bf16.msra.mxu1 %v5009_v27 }
  0xd0   : > { %4356 = vmatprep.subr.bf16.mxu1 %v4604_v14 }
  0xd2   : > { %3864 = vmatmul.mubr.f32.vlgmr.msra.gmra.mrb[8].mxu1 %v4974_v9 }
  0xd3   : > { %4358 = vmatpush3.bf16.msra.mxu1 %v4604_v14  ;;  %3866 = vmatprep.mubr.f32.mxu1 %v5012_v21 }
  0xd4   : > { %4360 = vmatprep.subr.bf16.mxu1 %v4613_v19 }
  0xd6   : > { %3867 = vmatmul.mubr.f32.gmra.mrb[10].mxu1 %v5020_v25 }
  0xd7   : > { %4362 = vmatpush3.bf16.msra.mxu1 %v4613_v19  ;;  %3869 = vmatprep.mubr.f32.mxu1 %v5036_v7 }
  0xd8   : > { %4364 = vmatprep.subr.bf16.mxu1 %v4618_v22 }
  0xda   : > { %3870 = vmatmul.mubr.f32.gmra.mrb[12].mxu1 %v5045_v29 }
  0xdb   : > { %4366 = vmatpush3.bf16.msra.mxu1 %v4618_v22  ;;  %3872 = vmatprep.mubr.f32.mxu1 %v5062_v11 }
  0xdc   : > { %4368 = vmatprep.subr.bf16.mxu1 %v4633_v28 }
  0xde   : > { %3873 = vmatmul.mubr.f32.gmra.mrb[14].mxu1 %v5071_v12 }
  0xdf   : > { %4370 = vmatpush3.bf16.msra.mxu1 %v4633_v28  ;;  %3907 = vmatprep.mubr.f32.mxu1 %v4907_v39 }
  0xe0   : > { %4372 = vmatprep.subr.bf16.mxu1 %v4681_v53 }
  0xe3   : > { %4374 = vmatpush3.bf16.msra.mxu1 %v4681_v53 }
  0xe4   : > { %4376 = vmatprep.subr.bf16.mxu1 %v4693_v60 }
  0xe7   : > { %4378 = vmatpush3.bf16.msra.mxu1 %v4693_v60 }
  0xe8   : > { %4380 = vmatprep.subr.bf16.mxu1 %v4770_v50 }
  0xeb   : > { %4382 = vmatpush3.bf16.msra.mxu1 %v4770_v50  ;;  %v226_v50 = vld [vmem:[%s5456_s3] sm:$0xf] }
  0xec   : > { %4384 = vmatprep.subr.bf16.mxu1 %v4800_v1  ;;  %v2202_v57 = vsel %vm2200_vm0, %v226_v50, 0 }
  0xef   : > { %4386 = vmatpush3.bf16.msra.mxu1 %v4800_v1  ;;  %v5337_v1 = vand.u32 4294901760, %v2202_v57 }
  0xf1   : > { %v5340_v54 = vsub.f32 %v2202_v57, %v5337_v1  ;;  %3919 = vmatprep.subr.mxu1 %v5337_v1 }
  0xf2   : > { %3908 = vmatmul.mubr.f32.vlgmr.msra.gmra.mrb[8].mxu1 %v4974_v9 }
  0xf3   : > { %3910 = vmatprep.mubr.f32.mxu1 %v5012_v21  ;;  %3920 = vmatpush3.msra.mxu1 %v5337_v1  ;;  %v5345_v30 = vand.u32 4294901760, %v5340_v54 }
  0xf5   : > { %v2354_v39 = vsub.f32 %v5340_v54, %v5345_v30 }
  0xf6   : > { %3911 = vmatmul.mubr.f32.gmra.mrb[10].mxu1 %v5020_v25 }
  0xf7   : > { %3913 = vmatprep.mubr.f32.mxu1 %v5036_v7 }
  0xfa   : > { %3914 = vmatmul.mubr.f32.gmra.mrb[12].mxu1 %v5045_v29  ;;  %v2355_v29 = vand.u32 4294901760, %v2354_v39 }
  0xfb   : > { %3916 = vmatprep.mubr.f32.mxu1 %v5062_v11 }
  0xfc   : > { %3933 = vmatprep.subr.mxu0 %v2355_v29 }
  0xfd   : > { %3934 = vmatpush3.msra.mxu0 %v2355_v29 }
  0xfe   : > { %3917 = vmatmul.mubr.f32.gmra.mrb[14].mxu1 %v5071_v12  ;;  %3947 = vmatprep.subr.mxu0 %v5340_v54 }
 0x105   : > { %v3425_v14 = vpop.f32.mrb[0].mxu1 }
 0x106   : > { %v314_v19 = vpop.f32.mrb[1].mxu1 }
 0x109   : > { %v3428_v22 = vpop.f32.mrb[2].mxu1 }
 0x10a   : > { %v334_v28 = vpop.f32.mrb[3].mxu1 }
 0x10d   : > { %v3431_v53 = vpop.f32.mrb[4].mxu1 }
 0x10e   : > { %v354_v60 = vpop.f32.mrb[5].mxu1 }
 0x111   : > { %v3434_v32 = vpop.f32.mrb[6].mxu1 }
 0x112   : > { %v374_v46 = vpop.f32.mrb[7].mxu1 }
 0x18d   : > { %v3645_v15 = vpop.f32.mrb[0].mxu0 }
 0x18e   : > { %v4387_v17 = vadd.f32 %v3645_v15, %v3425_v14  ;;  %v1123_v10 = vpop.f32.mrb[1].mxu0 }
 0x18f   : > { %v4388_v9 = vadd.f32 %v1123_v10, %v314_v19 }
 0x190   : > { %v2120_v33 = vmul.f32 0.03125, %v4387_v17 }
 0x191   : > { %v3648_v51 = vpop.f32.mrb[2].mxu0  ;;  %v2119_v11 = vmul.f32 0.03125, %v4388_v9 }
 0x192   : > { %v4389_v61 = vadd.f32 %v3648_v51, %v3428_v22  ;;  %v1135_v36 = vpop.f32.mrb[3].mxu0  ;;  %v2136_v4 = vmul.f32 %v2120_v33, %v2120_v33 }
 0x193   : > { %v4390_v27 = vadd.f32 %v1135_v36, %v334_v28  ;;  %v2135_v48 = vmul.f32 %v2119_v11, %v2119_v11 }
 0x194   : > { %v2122_v56 = vmul.f32 0.03125, %v4389_v61 }
 0x195   : > { %v3651_v21 = vpop.f32.mrb[4].mxu0  ;;  %v2121_v59 = vmul.f32 0.03125, %v4390_v27 }
 0x196   : > { %v4391_v52 = vadd.f32 %v3651_v21, %v3431_v53  ;;  %v1147_v25 = vpop.f32.mrb[5].mxu0  ;;  %v2138_v38 = vmul.f32 %v2122_v56, %v2122_v56 }
 0x197   : > { %v4392_v34 = vadd.f32 %v1147_v25, %v354_v60  ;;  %v2137_v20 = vmul.f32 %v2121_v59, %v2121_v59 }
 0x198   : > { %v2124_v63 = vmul.f32 0.03125, %v4391_v52 }
 0x199   : > { %v3654_v7 = vpop.f32.mrb[6].mxu0  ;;  %v2123_v3 = vmul.f32 0.03125, %v4392_v34 }
 0x19a   : > { %v4393_v31 = vadd.f32 %v3654_v7, %v3434_v32  ;;  %v1159_v35 = vpop.f32.mrb[7].mxu0  ;;  %v2140_v24 = vmul.f32 %v2124_v63, %v2124_v63 }
 0x19b   : > { %v4394_v62 = vadd.f32 %v1159_v35, %v374_v46  ;;  %v2139_v37 = vmul.f32 %v2123_v3, %v2123_v3 }
 0x19c   : > { %v2126_v47 = vmul.f32 0.03125, %v4393_v31 }
 0x19d   : > { %v2125_v14 = vmul.f32 0.03125, %v4394_v62 }
 0x19e   : > { %v2142_v50 = vmul.f32 %v2126_v47, %v2126_v47 }
 0x19f   : > { %v2141_v15 = vmul.f32 %v2125_v14, %v2125_v14 }
 0x1c5   : > { %v3909_v12 = vpop.f32.mrb[8].mxu1 }
 0x1c6   : > { %v2128_v26 = vmul.f32 0.03125, %v3909_v12  ;;  %v2073_v49 = vpop.f32.mrb[9].mxu1 }
 0x1c7   : > { %v2127_v40 = vmul.f32 0.03125, %v2073_v49 }
 0x1c8   : > { %v2144_v58 = vsub.f32 %v2128_v26, %v2136_v4 }
 0x1c9   : > { %v2143_v13 = vsub.f32 %v2127_v40, %v2135_v48  ;;  %v3912_v5 = vpop.f32.mrb[10].mxu1 }
 0x1ca   : > { %v2152_v8 = vmax.f32 %v2144_v58, 0.0  ;;  %v2130_v2 = vmul.f32 0.03125, %v3912_v5  ;;  %v2085_v43 = vpop.f32.mrb[11].mxu1 }
 0x1cb   : > { %v2151_v16 = vmax.f32 %v2143_v13, 0.0  ;;  %v2129_v41 = vmul.f32 0.03125, %v2085_v43 }
 0x1cc   : > { %v2160_v55 = vadd.f32 1e-05, %v2152_v8  ;;  %v2146_v23 = vsub.f32 %v2130_v2, %v2138_v38 }
 0x1cd   : > { %v2159_v45 = vadd.f32 1e-05, %v2151_v16  ;;  %v2145_v0 = vsub.f32 %v2129_v41, %v2137_v20  ;;  %v3915_v18 = vpop.f32.mrb[12].mxu1 }
 0x1ce   : > { %4515 = vrsqrt.f32 %v2160_v55  ;;  %v2154_v42 = vmax.f32 %v2146_v23, 0.0  ;;  %v2132_v44 = vmul.f32 0.03125, %v3915_v18  ;;  %v2097_v6 = vpop.f32.mrb[13].mxu1 }
 0x1cf   : > { %4517 = vrsqrt.f32 %v2159_v45  ;;  %v2153_v19 = vmax.f32 %v2145_v0, 0.0  ;;  %v2131_v22 = vmul.f32 0.03125, %v2097_v6 }
 0x1d0   : > { %v2162_v28 = vadd.f32 1e-05, %v2154_v42  ;;  %v2148_v53 = vsub.f32 %v2132_v44, %v2140_v24 }
 0x1d1   : > { %v2161_v60 = vadd.f32 1e-05, %v2153_v19  ;;  %v2147_v32 = vsub.f32 %v2131_v22, %v2139_v37  ;;  %v3918_v46 = vpop.f32.mrb[14].mxu1 }
 0x1d2   : > { %4519 = vrsqrt.f32 %v2162_v28  ;;  %v2156_v57 = vmax.f32 %v2148_v53, 0.0  ;;  %v2134_v39 = vmul.f32 0.03125, %v3918_v46  ;;  %v2109_v29 = vpop.f32.mrb[15].mxu1 }
 0x1d3   : > { %4521 = vrsqrt.f32 %v2161_v60  ;;  %v2155_v17 = vmax.f32 %v2147_v32, 0.0  ;;  %v2133_v10 = vmul.f32 0.03125, %v2109_v29 }
 0x1d4   : > { %v2164_v9 = vadd.f32 1e-05, %v2156_v57  ;;  %v2150_v51 = vsub.f32 %v2134_v39, %v2142_v50 }
 0x1d5   : > { %v2163_v61 = vadd.f32 1e-05, %v2155_v17  ;;  %v2149_v36 = vsub.f32 %v2133_v10, %v2141_v15 }
 0x1d6   : > { %4523 = vrsqrt.f32 %v2164_v9  ;;  %v2158_v27 = vmax.f32 %v2150_v51, 0.0 }
 0x1d7   : > { %4525 = vrsqrt.f32 %v2163_v61  ;;  %v2157_v21 = vmax.f32 %v2149_v36, 0.0 }
 0x1d8   : > { %v4516_v52 = vpop.eup %4515  ;;  %v2166_v25 = vadd.f32 1e-05, %v2158_v27 }
 0x1d9   : > { %v4518_v34 = vpop.eup %4517  ;;  %v2165_v7 = vadd.f32 1e-05, %v2157_v21  ;;  %v2180_v31 = vsel %vm2175_vm1, %v4516_v52, 0 }
 0x1da   : > { %4527 = vrsqrt.f32 %v2166_v25  ;;  %v2177_v35 = vsel %vm2175_vm1, %v4518_v34, 0  ;;  %v5352_v62 = vand.u32 4294901760, %v2180_v31 }
 0x1db   : > { %4529 = vrsqrt.f32 %v2165_v7  ;;  %v5354_v33 = vand.u32 4294901760, %v2177_v35 }
 0x1dc   : > { %v4520_v11 = vpop.eup %4519  ;;  %v5357_v12 = vsub.f32 %v2180_v31, %v5352_v62 }
 0x1dd   : > { %v4522_v4 = vpop.eup %4521  ;;  %3935 = vmatprep.mubr.f32.mxu0 %v5354_v33  ;;  %v2186_v56 = vsel %vm2175_vm1, %v4520_v11, 0  ;;  %v5362_v26 = vsub.f32 %v2177_v35, %v5354_v33  ;;  %v3046_v35 = vld [vmem:[%s5454_s1] ss:$0 sm:$0xff] }
 0x1de   : > { %3936 = vmatmul.mubr.f32.vlgmr.msra.gmra.mrb[8].mxu0 %v5352_v62  ;;  %v2183_v49 = vsel %vm2175_vm1, %v4522_v4, 0  ;;  %v5366_v48 = vand.u32 4294901760, %v2186_v56  ;;  %v2282_v59 = vand.u32 4294901760, %v5357_v12 }
 0x1df   : > { %3948 = vmatpush3.msra.mxu0 %v5340_v54  ;;  %v5370_v40 = vand.u32 4294901760, %v2183_v49  ;;  %v2272_v58 = vand.u32 4294901760, %v5362_v26 }
 0x1e0   : > { %v4524_v63 = vpop.eup %4523  ;;  %v2283_v3 = vsub.f32 %v5357_v12, %v2282_v59  ;;  %v5377_v13 = vsub.f32 %v2186_v56, %v5366_v48  ;;  %3961 = vmatprep.subr.mxu0 %v5337_v1 }
 0x1e1   : > { %v4526_v5 = vpop.eup %4525  ;;  %3938 = vmatprep.mubr.f32.mxu0 %v5370_v40  ;;  %v2273_v54 = vsub.f32 %v5362_v26, %v2272_v58  ;;  %v2192_v38 = vsel %vm2175_vm1, %v4524_v63, 0  ;;  %v2291_v8 = vsub.f32 %v2183_v49, %v5370_v40 }
 0x1e2   : > { %3939 = vmatmul.mubr.f32.gmra.mrb[10].mxu0 %v5366_v48  ;;  %v2189_v2 = vsel %vm2175_vm1, %v4526_v5, 0  ;;  %v5388_v43 = vand.u32 4294901760, %v2192_v38  ;;  %v2302_v20 = vand.u32 4294901760, %v5377_v13  ;;  %v2284_v24 = vand.u32 4294901760, %v2283_v3  ;;  %v4534_v3 = vld [vmem:[%s4679_s20 + $0x10] sm:$0xff] }
 0x1e3   : > { %v2274_v16 = vand.u32 4294901760, %v2273_v54  ;;  %v5391_v41 = vand.u32 4294901760, %v2189_v2  ;;  %v2292_v55 = vand.u32 4294901760, %v2291_v8 }
 0x1e4   : > { %v4528_v23 = vpop.eup %4527  ;;  %v2303_v37 = vsub.f32 %v5377_v13, %v2302_v20  ;;  %v2321_v45 = vsub.f32 %v2192_v38, %v5388_v43 }
 0x1e5   : > { %v4530_v0 = vpop.eup %4529  ;;  %3921 = vmatprep.mubr.f32.mxu1 %v2274_v16  ;;  %3941 = vmatprep.mubr.f32.mxu0 %v5391_v41  ;;  %v2293_v18 = vsub.f32 %v2291_v8, %v2292_v55  ;;  %v2198_v47 = vsel %vm2175_vm1, %v4528_v23, 0  ;;  %v2311_v42 = vsub.f32 %v2189_v2, %v5391_v41 }
 0x1e6   : > { %3922 = vmatmul.mubr.f32.vlgmr.msra.gmra.mrb[16].mxu1 %v2284_v24  ;;  %3942 = vmatmul.mubr.f32.gmra.mrb[12].mxu0 %v5388_v43  ;;  %v2195_v44 = vsel %vm2175_vm1, %v4530_v0, 0  ;;  %v2340_v6 = vand.u32 4294901760, %v2198_v47  ;;  %v2322_v14 = vand.u32 4294901760, %v2321_v45  ;;  %v2304_v53 = vand.u32 4294901760, %v2303_v37 }
 0x1e7   : > { %v2294_v19 = vand.u32 4294901760, %v2293_v18  ;;  %v2330_v22 = vand.u32 4294901760, %v2195_v44  ;;  %v2312_v28 = vand.u32 4294901760, %v2311_v42 }
 0x1e8   : > { %v2323_v60 = vsub.f32 %v2321_v45, %v2322_v14  ;;  %v2341_v32 = vsub.f32 %v2198_v47, %v2340_v6  ;;  %v4537_v47 = vld [vmem:[%s4679_s20 + $0x38] sm:$0xff] }
 0x1e9   : > { %3924 = vmatprep.mubr.f32.mxu1 %v2294_v19  ;;  %3944 = vmatprep.mubr.f32.mxu0 %v2330_v22  ;;  %v2313_v46 = vsub.f32 %v2311_v42, %v2312_v28  ;;  %v2331_v50 = vsub.f32 %v2195_v44, %v2330_v22  ;;  %v4538_v44 = vld [vmem:[%s4679_s20 + $0x30] sm:$0xff] }
 0x1ea   : > { %3925 = vmatmul.mubr.f32.gmra.mrb[18].mxu1 %v2304_v53  ;;  %3945 = vmatmul.mubr.f32.gmra.mrb[14].mxu0 %v2340_v6  ;;  %v2342_v57 = vand.u32 4294901760, %v2341_v32  ;;  %v2324_v15 = vand.u32 4294901760, %v2323_v60 }
 0x1eb   : > { %3949 = vmatprep.mubr.f32.mxu0 %v5362_v26  ;;  %v2314_v39 = vand.u32 4294901760, %v2313_v46  ;;  %v2332_v29 = vand.u32 4294901760, %v2331_v50 }
 0x1ec   : > { %v2343_v17 = vsub.f32 %v2341_v32, %v2342_v57 }
 0x1ed   : > { %3927 = vmatprep.mubr.f32.mxu1 %v2314_v39  ;;  %v2333_v10 = vsub.f32 %v2331_v50, %v2332_v29 }
 0x1ee   : > { %3928 = vmatmul.mubr.f32.gmra.mrb[20].mxu1 %v2324_v15  ;;  %3950 = vmatmul.mubr.f32.vlgmr.msra.gmra.mrb[8].mxu0 %v5357_v12  ;;  %v2344_v51 = vand.u32 4294901760, %v2343_v17  ;;  %v4532_v12 = vld [vmem:[%s4679_s20] sm:$0xff] }
 0x1ef   : > { %3962 = vmatpush3.msra.mxu0 %v5337_v1  ;;  %3952 = vmatprep.mubr.f32.mxu0 %v2291_v8  ;;  %v2334_v9 = vand.u32 4294901760, %v2333_v10 }
 0x1f0   : > { %3975 = vmatprep.subr.mxu0 %v5345_v30 }
 0x1f1   : > { %3930 = vmatprep.mubr.f32.mxu1 %v2334_v9 }
 0x1f2   : > { %3931 = vmatmul.mubr.f32.gmra.mrb[22].mxu1 %v2344_v51  ;;  %3953 = vmatmul.mubr.f32.gmra.mrb[10].mxu0 %v5377_v13 }
 0x1f3   : > { %3955 = vmatprep.mubr.f32.mxu0 %v2311_v42 }
 0x1f6   : > { %3956 = vmatmul.mubr.f32.gmra.mrb[12].mxu0 %v2321_v45 }
 0x1f7   : > { %3958 = vmatprep.mubr.f32.mxu0 %v2331_v50 }
 0x1fa   : > { %3959 = vmatmul.mubr.f32.gmra.mrb[14].mxu0 %v2341_v32 }
 0x1fb   : > { %3963 = vmatprep.mubr.f32.mxu0 %v2272_v58  ;;  %v4533_v58 = vld [vmem:[%s4679_s20 + $0x18] sm:$0xff] }
 0x1fe   : > { %3964 = vmatmul.mubr.f32.vlgmr.msra.gmra.mrb[8].mxu0 %v2282_v59 }
 0x1ff   : > { %3976 = vmatpush3.msra.mxu0 %v5345_v30  ;;  %3966 = vmatprep.mubr.f32.mxu0 %v2292_v55 }
 0x200   : > { %3989 = vmatprep.subr.mxu0 %v5337_v1 }
 0x202   : > { %3967 = vmatmul.mubr.f32.gmra.mrb[10].mxu0 %v2302_v20  ;;  %v4535_v20 = vld [vmem:[%s4679_s20 + $0x28] sm:$0xff] }
 0x203   : > { %3969 = vmatprep.mubr.f32.mxu0 %v2312_v28 }
 0x206   : > { %3970 = vmatmul.mubr.f32.gmra.mrb[12].mxu0 %v2322_v14 }
 0x207   : > { %3972 = vmatprep.mubr.f32.mxu0 %v2332_v29 }
 0x20a   : > { %3973 = vmatmul.mubr.f32.gmra.mrb[14].mxu0 %v2342_v57 }
 0x20b   : > { %3977 = vmatprep.mubr.f32.mxu0 %v5354_v33 }
 0x20e   : > { %3978 = vmatmul.mubr.f32.vlgmr.msra.gmra.mrb[8].mxu0 %v5352_v62 }
 0x20f   : > { %3990 = vmatpush3.msra.mxu0 %v5337_v1  ;;  %3980 = vmatprep.mubr.f32.mxu0 %v5370_v40 }
 0x212   : > { %3981 = vmatmul.mubr.f32.gmra.mrb[10].mxu0 %v5366_v48 }
 0x213   : > { %3983 = vmatprep.mubr.f32.mxu0 %v5391_v41 }
 0x216   : > { %3984 = vmatmul.mubr.f32.gmra.mrb[12].mxu0 %v5388_v43 }
 0x217   : > { %3986 = vmatprep.mubr.f32.mxu0 %v2330_v22 }
 0x21a   : > { %3987 = vmatmul.mubr.f32.gmra.mrb[14].mxu0 %v2340_v6 }
 0x21b   : > { %3991 = vmatprep.mubr.f32.mxu0 %v5354_v33  ;;  %v4531_v33 = vld [vmem:[%s4679_s20 + $0x8] sm:$0xff] }
 0x21e   : > { %3992 = vmatmul.mubr.f32.vlgmr.msra.gmra.mrb[8].mxu0 %v5352_v62 }
 0x21f   : > { %3994 = vmatprep.mubr.f32.mxu0 %v5370_v40 }
 0x222   : > { %3995 = vmatmul.mubr.f32.gmra.mrb[10].mxu0 %v5366_v48 }
 0x223   : > { %3997 = vmatprep.mubr.f32.mxu0 %v5391_v41  ;;  %v4536_v41 = vld [vmem:[%s4679_s20 + $0x20] sm:$0xff] }
 0x226   : > { %3998 = vmatmul.mubr.f32.gmra.mrb[12].mxu0 %v5388_v43 }
 0x227   : > { %4000 = vmatprep.mubr.f32.mxu0 %v2330_v22 }
 0x22a   : > { %4001 = vmatmul.mubr.f32.gmra.mrb[14].mxu0 %v2340_v6 }
 0x2b9   : > { %v3923_v1 = vpop.f32.mrb[16].mxu1 }
 0x2ba   : > { %v2276_v30 = vpop.f32.mrb[17].mxu1 }
 0x2bd   : > { %v3926_v61 = vpop.f32.mrb[18].mxu1 }
 0x2be   : > { %v2296_v36 = vpop.f32.mrb[19].mxu1 }
 0x2c1   : > { %v3929_v27 = vpop.f32.mrb[20].mxu1 }
 0x2c2   : > { %v2316_v21 = vpop.f32.mrb[21].mxu1 }
 0x2c5   : > { %v3932_v52 = vpop.f32.mrb[22].mxu1 }
 0x2c6   : > { %v2336_v25 = vpop.f32.mrb[23].mxu1 }
 0x2f1   : > { %v3993_v34 = vpop.f32.mrb[8].mxu0 }
 0x2f2   : > { %v4395_v7 = vadd.f32 %v3993_v34, %v3923_v1  ;;  %v2905_v31 = vpop.f32.mrb[9].mxu0 }
 0x2f3   : > { %v4396_v62 = vadd.f32 %v2905_v31, %v2276_v30 }
 0x2f4   : > { %v2952_v11 = vmul.f32 %v4531_v33, %v4395_v7 }
 0x2f5   : > { %v2951_v4 = vmul.f32 %v4532_v12, %v4396_v62  ;;  %v3996_v56 = vpop.f32.mrb[10].mxu0 }
 0x2f6   : > { %v2966_v26 = vmul.f32 %v3046_v35, %v2952_v11  ;;  %v4397_v49 = vadd.f32 %v3996_v56, %v3926_v61  ;;  %v2917_v48 = vpop.f32.mrb[11].mxu0 }
 0x2f7   : > { %v2965_v59 = vmul.f32 %v3046_v35, %v2951_v4  ;;  %v4398_v40 = vadd.f32 %v2917_v48, %v2296_v36 }
 0x2f8   : > { %2974 = vst [vmem:[%s5433_s10 + $0x8] sm:$0xff] %v2966_v26  ;;  %v2954_v63 = vmul.f32 %v4533_v58, %v4397_v49 }
 0x2f9   : > { %2973 = vst [vmem:[%s5433_s10] sm:$0xff] %v2965_v59  ;;  %v2953_v13 = vmul.f32 %v4534_v3, %v4398_v40  ;;  %v3999_v5 = vpop.f32.mrb[12].mxu0 }
 0x2fa   : > { %v2968_v54 = vmul.f32 %v3046_v35, %v2954_v63  ;;  %v4399_v38 = vadd.f32 %v3999_v5, %v3929_v27  ;;  %v2929_v8 = vpop.f32.mrb[13].mxu0 }
 0x2fb   : > { %v2967_v2 = vmul.f32 %v3046_v35, %v2953_v13  ;;  %v4400_v43 = vadd.f32 %v2929_v8, %v2316_v21 }
 0x2fc   : > { %2976 = vst [vmem:[%s5433_s10 + $0x18] sm:$0xff] %v2968_v54  ;;  %v2956_v16 = vmul.f32 %v4535_v20, %v4399_v38 }
 0x2fd   : > { %2975 = vst [vmem:[%s5433_s10 + $0x10] sm:$0xff] %v2967_v2  ;;  %v2955_v55 = vmul.f32 %v4536_v41, %v4400_v43  ;;  %v4002_v23 = vpop.f32.mrb[14].mxu0 }
 0x2fe   : > { %v2970_v24 = vmul.f32 %v3046_v35, %v2956_v16  ;;  %v4401_v37 = vadd.f32 %v4002_v23, %v3932_v52  ;;  %v2941_v45 = vpop.f32.mrb[15].mxu0 }
 0x2ff   : > { %v2969_v0 = vmul.f32 %v3046_v35, %v2955_v55  ;;  %v4402_v18 = vadd.f32 %v2941_v45, %v2336_v25 }
 0x300   : > { %2978 = vst [vmem:[%s5433_s10 + $0x28] sm:$0xff] %v2970_v24  ;;  %v2958_v42 = vmul.f32 %v4537_v47, %v4401_v37 }
 0x301   : > { %2977 = vst [vmem:[%s5433_s10 + $0x20] sm:$0xff] %v2969_v0  ;;  %v2957_v6 = vmul.f32 %v4538_v44, %v4402_v18 }
 0x302   : > { %v2972_v14 = vmul.f32 %v3046_v35, %v2958_v42 }
 0x303   : > { %v2971_v19 = vmul.f32 %v3046_v35, %v2957_v6 }
 0x304   : > { %2980 = vst [vmem:[%s5433_s10 + $0x38] sm:$0xff] %v2972_v14 }
 0x305   : > { %2979 = vst [vmem:[%s5433_s10 + $0x30] sm:$0xff] %v2971_v19 }
 0x306 PF: > { %s14_s15 = sadd.s32 1, %s4545_s15  }
 0x307   : > { %p11_p4 = scmp.ge.s32.totalorder %s14_s15, 4  }
 0x309   :  { %13 = sbr.rel (!%p11_p4) target bundleno = 1 (0x1), region = 66 }

</bundles_post_ra>
